<compile_context>
chip_gen: v7x
topology: tpu7x:2x2x1
jax: 0.10.0
libtpu: 0.0.40
codegen_flags: <defaults>
</compile_context>

<pallas_src>
import jax
import jax.numpy as jnp
from jax import lax
from jax.experimental import pallas as pl
from jax.experimental.pallas import tpu as pltpu


def _make_kernel(H, chunk, n_chunks):
    """Kernel factory: chunk geometry is static (baked in at trace time)."""

    def kernel(x_ref, pk_ref, w2_ref, o_ref):
        # Resident params: loaded once per grid step, hoisted out of the
        # chunk loop (JAX does not CSE broadcasts/loads inside loops).
        pk = pk_ref[...]                  # (H, 8): w1 | b1 | b2 | w3 | b3 | pad
        w1 = pk[:, 0:1]                   # (H, 1)
        b1 = pk[:, 1:2]                   # (H, 1)
        b2 = pk[:, 2:3]                   # (H, 1)
        w3 = pk[:, 3:4]                   # (H, 1)  (fc3 weight as a column)
        b3 = pk[0:1, 4:5]                 # (1, 1)
        w2 = w2_ref[...]                  # (H, H)

        def body(c, carry):
            start = pl.multiple_of(c * chunk, chunk)
            xc = x_ref[:, pl.ds(start, chunk)]                  # (1, chunk)
            # fc1: K=1 contraction -> pure VPU broadcast multiply (off MXU).
            h1 = jnp.maximum(w1 * xc + b1, 0.0)                 # (H, chunk)
            # fc2: the only real matmul, (H,H) @ (H,chunk) on the MXU.
            h2 = jnp.dot(w2, h1, preferred_element_type=jnp.float32)
            h2 = jnp.maximum(h2 + b2, 0.0)                      # (H, chunk)
            # fc3: single output feature -> VPU multiply + sublane reduce.
            o = jnp.sum(w3 * h2, axis=0, keepdims=True) + b3    # (1, chunk)
            o_ref[:, pl.ds(start, chunk)] = jnp.maximum(o, 0.0)
            return carry

        # Short, fixed trip-count inner loop: unroll for LLO visibility.
        lax.fori_loop(0, n_chunks, body, None, unroll=True)

    return kernel


def rvv_fc_forward(x, params, *, tb=4096, chunk=512):
    """Fused forward pass of rvvFC.

    x      : (B, 1) float32
    params : PyTorch-oriented tensors:
             w1 (H,1), b1 (H,), w2 (H,H), b2 (H,), w3 (1,H), b3 (1,)
    Returns (B, 1) float32.
    """
    w1, b1, w2, b2, w3, b3 = (params["w1"], params["b1"], params["w2"],
                              params["b2"], params["w3"], params["b3"])
    B = x.shape[0]
    H = w1.shape[0]

    # --- tile geometry -------------------------------------------------------
    # chunk: inner lane-chunk (caps live vregs); multiple of 128.
    chunk = max(128, (chunk // 128) * 128)
    b128 = pl.cdiv(B, 128) * 128
    chunk = min(chunk, b128)              # tiny batch: one chunk covers it
    total_chunks = pl.cdiv(B, chunk)
    # Chunks per grid step: as large as `tb` allows, but keep >=2 grid steps
    # whenever there is more than one chunk of work (v7x megacore sharding).
    chunks_per_tile = max(1, min(max(1, tb // chunk), pl.cdiv(total_chunks, 2)))
    tb = chunks_per_tile * chunk
    n_steps = pl.cdiv(B, tb)
    b_pad = n_steps * tb
    grid = (n_steps,)

    # --- operand prep --------------------------------------------------------
    # Batch on the lane axis, padded to the tile boundary. Padded lanes carry
    # garbage through the MLP and are sliced off at the end.
    x_lanes = jnp.pad(x.astype(jnp.float32).reshape(1, B),
                      ((0, 0), (0, b_pad - B)))

    # Pack the five tiny parameter tensors into one (H, 8) resident array.
    pk = jnp.zeros((H, 8), jnp.float32)
    pk = pk.at[:, 0].set(w1.reshape(H).astype(jnp.float32))   # fc1 weight
    pk = pk.at[:, 1].set(b1.astype(jnp.float32))              # fc1 bias
    pk = pk.at[:, 2].set(b2.astype(jnp.float32))              # fc2 bias
    pk = pk.at[:, 3].set(w3.reshape(H).astype(jnp.float32))   # fc3 weight col
    pk = pk.at[0, 4].set(b3.reshape(()).astype(jnp.float32))  # fc3 bias
    w2f = w2.astype(jnp.float32)

    # Constant block index across the batch grid -> params stay VMEM-resident
    # (Pallas skips the re-DMA between grid steps).
    # NOTE: pipeline_mode=pl.Buffered(1) would also drop the redundant second
    # buffer for these constant-index blocks; left at the default here for
    # lowering portability (the VMEM/DMA cost is a few KB either way).
    def resident(shape):
        return pl.BlockSpec(shape, lambda i: (0, 0))

    # Advisory cost so XLA schedules the surrounding pad/slice ops sensibly.
    flops = int(b_pad) * (2 * H * H + 4 * H)
    bytes_accessed = 8 * int(b_pad) + 4 * (H * H + H * 8)
    cost = pl.CostEstimate(flops=flops, transcendentals=0,
                           bytes_accessed=bytes_accessed)

    kernel = _make_kernel(H, chunk, tb // chunk)

    out = pl.pallas_call(
        kernel,
        out_shape=jax.ShapeDtypeStruct((1, b_pad), jnp.float32),
        grid=grid,
        in_specs=[
            pl.BlockSpec((1, tb), lambda i: (0, i)),   # x batch tile
            resident((H, 8)),                          # packed small params
            resident((H, H)),                          # fc2 weight
        ],
        out_specs=pl.BlockSpec((1, tb), lambda i: (0, i)),
        compiler_params=pltpu.CompilerParams(
            dimension_semantics=("parallel",)),        # megacore on v7x
        cost_estimate=cost,
    )(x_lanes, pk, w2f)

    return out[:, :B].T                                # back to (B, 1)


def init_params(key, n_hidden):
    """Deterministic init mimicking nn.Linear's uniform(-1/sqrt(fan_in), +).
    Weights are stored in PyTorch (out_features, in_features) orientation."""
    ks = jax.random.split(key, 6)

    def lin(kw, kb, fan_in, fan_out):
        bound = 1.0 / float(fan_in) ** 0.5
        w = jax.random.uniform(kw, (fan_out, fan_in), jnp.float32, -bound, bound)
        b = jax.random.uniform(kb, (fan_out,), jnp.float32, -bound, bound)
        return w, b

    w1, b1 = lin(ks[0], ks[1], 1, n_hidden)
    w2, b2 = lin(ks[2], ks[3], n_hidden, n_hidden)
    w3, b3 = lin(ks[4], ks[5], n_hidden, 1)
    return {"w1": w1, "b1": b1, "w2": w2, "b2": b2, "w3": w3, "b3": b3}


def rvv_fc_reference(x, p):
    h1 = jnp.maximum(x @ p["w1"].T + p["b1"], 0.0)
    h2 = jnp.maximum(h1 @ p["w2"].T + p["b2"], 0.0)
    return jnp.maximum(h2 @ p["w3"].T + p["b3"], 0.0)


if __name__ == "__main__":
    key = jax.random.PRNGKey(0)
    n_hidden = 32
    params = init_params(key, n_hidden)

    # Same input as the torch script: arange(0, 1.1, 0.1).unsqueeze(1) -> (11, 1)
    x_small = (jnp.arange(11, dtype=jnp.float32) * 0.1).reshape(-1, 1)
    out_small = jax.block_until_ready(rvv_fc_forward(x_small, params))
    ref_small = rvv_fc_reference(x_small, params)
    assert out_small.shape == x_small.shape, (out_small.shape, x_small.shape)
    assert jnp.allclose(out_small, ref_small, atol=1e-5, rtol=1e-5)

    # Larger batch: exercises the multi-chunk inner loop, the >=2-step grid
    # (v7x megacore path) and the batch-padding slice-off.
    x_big = jax.random.uniform(jax.random.PRNGKey(1), (2200, 1), jnp.float32)
    out_big = jax.block_until_ready(rvv_fc_forward(x_big, params))
    ref_big = rvv_fc_reference(x_big, params)
    assert out_big.shape == x_big.shape, (out_big.shape, x_big.shape)
    assert jnp.allclose(out_big, ref_big, atol=1e-5, rtol=1e-5)

    print("KERNEL_OK")
</pallas_src>

<mosaic_0001>
module attributes {stable_mosaic.version = 11 : i64} {
  func.func @kernel(%arg0: i32, %arg1: memref<1x128xf32, #tpu.memory_space<vmem>>, %arg2: memref<32x8xf32, #tpu.memory_space<vmem>>, %arg3: memref<32x32xf32, #tpu.memory_space<vmem>>, %arg4: memref<1x128xf32, #tpu.memory_space<vmem>>) attributes {dimension_semantics = [#tpu.dimension_semantics<parallel>], iteration_bounds = array<i64: 1>, scalar_prefetch = 0 : i64, scratch_operands = 0 : i64, tpu.core_type = #tpu.core_type<tc>, window_params = [{transform_indices = @transform_0, window_bounds = array<i64: 1, 128>}, {pipeline_mode = #tpu.pipeline_mode<synchronous>, transform_indices = @transform_1, window_bounds = array<i64: 32, 8>}, {pipeline_mode = #tpu.pipeline_mode<synchronous>, transform_indices = @transform_2, window_bounds = array<i64: 32, 32>}, {transform_indices = @transform_3, window_bounds = array<i64: 1, 128>}]} {
    %c0 = arith.constant 0 : index
    %c0_0 = arith.constant 0 : index
    %0 = vector.load %arg2[%c0, %c0_0] : memref<32x8xf32, #tpu.memory_space<vmem>>, vector<32x8xf32>
    %1 = vector.extract_strided_slice %0 {offsets = [0, 0], sizes = [32, 1], strides = [1, 1]} : vector<32x8xf32> to vector<32x1xf32>
    %2 = vector.extract_strided_slice %0 {offsets = [0, 1], sizes = [32, 1], strides = [1, 1]} : vector<32x8xf32> to vector<32x1xf32>
    %3 = vector.extract_strided_slice %0 {offsets = [0, 2], sizes = [32, 1], strides = [1, 1]} : vector<32x8xf32> to vector<32x1xf32>
    %4 = vector.extract_strided_slice %0 {offsets = [0, 3], sizes = [32, 1], strides = [1, 1]} : vector<32x8xf32> to vector<32x1xf32>
    %5 = vector.extract_strided_slice %0 {offsets = [0, 4], sizes = [1, 1], strides = [1, 1]} : vector<32x8xf32> to vector<1x1xf32>
    %c0_1 = arith.constant 0 : index
    %c0_2 = arith.constant 0 : index
    %6 = vector.load %arg3[%c0_1, %c0_2] : memref<32x32xf32, #tpu.memory_space<vmem>>, vector<32x32xf32>
    %c0_i32 = arith.constant 0 : i32
    %c128_i32 = arith.constant 128 : i32
    %7 = arith.muli %c0_i32, %c128_i32 : i32
    %8 = tpu.assume_multiple %7, 128 : i32
    %c0_3 = arith.constant 0 : index
    %9 = arith.index_cast %8 : i32 to index
    %10 = vector.load %arg1[%c0_3, %9] : memref<1x128xf32, #tpu.memory_space<vmem>>, vector<1x128xf32>
    %11 = vector.broadcast %1 : vector<32x1xf32> to vector<32x128xf32>
    %12 = vector.broadcast %10 : vector<1x128xf32> to vector<32x128xf32>
    %13 = arith.mulf %11, %12 : vector<32x128xf32>
    %14 = vector.broadcast %2 : vector<32x1xf32> to vector<32x128xf32>
    %15 = arith.addf %13, %14 : vector<32x128xf32>
    %cst = arith.constant 0.000000e+00 : f32
    %16 = vector.broadcast %cst : f32 to vector<32x128xf32>
    %17 = arith.maximumf %15, %16 : vector<32x128xf32>
    %cst_4 = arith.constant dense<0.000000e+00> : vector<32x128xf32>
    %18 = tpu.matmul %6, %17, %cst_4 {dimension_numbers = #tpu.dot_dimension_numbers<[1], [0], [0], [1], [0, 0, 1, 1], [], []>} : vector<32x32xf32>, vector<32x128xf32>, vector<32x128xf32> -> vector<32x128xf32>
    %19 = vector.broadcast %3 : vector<32x1xf32> to vector<32x128xf32>
    %20 = arith.addf %18, %19 : vector<32x128xf32>
    %cst_5 = arith.constant 0.000000e+00 : f32
    %21 = vector.broadcast %cst_5 : f32 to vector<32x128xf32>
    %22 = arith.maximumf %20, %21 : vector<32x128xf32>
    %23 = vector.broadcast %4 : vector<32x1xf32> to vector<32x128xf32>
    %24 = arith.mulf %23, %22 : vector<32x128xf32>
    %cst_6 = arith.constant dense<0.000000e+00> : vector<128xf32>
    %25 = vector.multi_reduction <add>, %24, %cst_6 [0] : vector<32x128xf32> to vector<128xf32>
    %26 = vector.shape_cast %25 : vector<128xf32> to vector<1x128xf32>
    %27 = vector.broadcast %5 : vector<1x1xf32> to vector<1x128xf32>
    %28 = arith.addf %26, %27 : vector<1x128xf32>
    %cst_7 = arith.constant 0.000000e+00 : f32
    %29 = vector.broadcast %cst_7 : f32 to vector<1x128xf32>
    %30 = arith.maximumf %28, %29 : vector<1x128xf32>
    %c0_8 = arith.constant 0 : index
    %31 = arith.index_cast %8 : i32 to index
    %32 = vector.load %arg4[%c0_8, %31] : memref<1x128xf32, #tpu.memory_space<vmem>>, vector<1x128xf32>
    tpu.vector_store %arg4[%c0_8, %31], %30 {strides = array<i32>} : memref<1x128xf32, #tpu.memory_space<vmem>>, vector<1x128xf32>,
    %c1_i32 = arith.constant 1 : i32
    return
  }
  func.func @transform_0(%arg0: i32) -> (i32, i32) {
    %c0_i32 = arith.constant 0 : i32
    %c0_i32_0 = arith.constant 0 : i32
    return %c0_i32, %arg0 : i32, i32
  }
  func.func @transform_1(%arg0: i32) -> (i32, i32) {
    %c0_i32 = arith.constant 0 : i32
    %c0_i32_0 = arith.constant 0 : i32
    %c0_i32_1 = arith.constant 0 : i32
    return %c0_i32, %c0_i32_0 : i32, i32
  }
  func.func @transform_2(%arg0: i32) -> (i32, i32) {
    %c0_i32 = arith.constant 0 : i32
    %c0_i32_0 = arith.constant 0 : i32
    %c0_i32_1 = arith.constant 0 : i32
    return %c0_i32, %c0_i32_0 : i32, i32
  }
  func.func @transform_3(%arg0: i32) -> (i32, i32) {
    %c0_i32 = arith.constant 0 : i32
    %c0_i32_0 = arith.constant 0 : i32
    return %c0_i32, %arg0 : i32, i32
  }
}

</mosaic_0001>

<bundles_post_ra>
// kernel: tpu_custom_call.1
= control target key start
LH: loop header
LB: loop body
LE: loop exit
PB: predicated region body
PF: predicated region fallthrough
CT: control target
= control target key end

     0   :  { %v326_v1 = vmov 1   ;;  %v327_v2 = vmov 0   ;;  %s395_s0 = inlined_call_operand.vmem [shape: f32[1,128], index: 0, kind: input, shape index: {}]   ;;  %s396_s1 = inlined_call_operand.vmem [shape: f32[32,8], index: 1, kind: input, shape index: {}]   ;;  %s397_s2 = inlined_call_operand.vmem [shape: f32[32,32], index: 2, kind: input, shape index: {}]   ;;  %s398_s3 = inlined_call_operand.hbm [shape: f32[1,128], index: 3, kind: output, shape index: {}]  }
   0x1   :  { %v15_v0 = vld [vmem:[%s396_s1] sm:$0xff]  ;;  %292 = vset.pattern.permute.xlu1 %v326_v1  ;;  %291 = vset.pattern.permute.xlu0 %v327_v2 }
   0x2   :  { %8 = vsyncpa [#allocation3], 0  ;;  %55 = vperm.xlu1 %292, %v15_v0   ;;  %26 = vperm.xlu0 %291, %v15_v0   ;;  %v16_v3 = vld [vmem:[%s396_s1 + $0x8] sm:$0xff]  ;;  %v17_v4 = vld [vmem:[%s396_s1 + $0x10] sm:$0xff]  ;;  %vm94_vm0 = vcmask 261120   ;;  %v328_v8 = vmov 2  }
   0x3   :  { %v18_v5 = vld [vmem:[%s396_s1 + $0x18] sm:$0xff]  ;;  %v19_v6 = vld [vmem:[%s397_s2] sm:$0xff]  ;;  %v21_v7 = vld [vmem:[%s397_s2 + $0x10] sm:$0xff]  ;;  %v329_v9 = vmov 3   ;;  %v330_v10 = vmov 4  }
   0x4   :  { %267 = vmatprep.mubr.msk.f32.mxu0 %vm94_vm0, %v19_v6  ;;  %270 = vmatprep.mubr.msk.f32.mxu1 %vm94_vm0, %v21_v7  ;;  %v246_v11 = vld [vmem:[%s395_s0] ss:$0 sm:$0xff]  ;;  %v20_v34 = vld [vmem:[%s397_s2 + $0x8] sm:$0xff]  ;;  %v22_v35 = vld [vmem:[%s397_s2 + $0x18] sm:$0xff]  ;;  %s331_s2 = smov [#allocation2]  }
   0x5   :  { %s238_s28 = sshll.u32 %s331_s2, 4  ;;  %s239_s28 = int_to_ptr.vmem [resolvable:$true] %s238_s28 }
   0x6   :  { %59 = vperm.xlu1 %292, %v16_v3   ;;  %31 = vperm.xlu0 %291, %v16_v3   ;;  %s302_s29 = scalar_lea.vmem %s239_s28, 16  ;;  %s306_s30 = scalar_lea.vmem %s239_s28, 32 }
   0x7   :  { %p303_p0 = scmp.ne.s32.totalorder %s239_s28, %s302_s29  ;;  %p307_p1 = scmp.lt.s32.totalorder %s239_s28, %s239_s28 }
   0x8   :  { %p308_p2 = scmp.lt.s32.totalorder %s306_s30, %s302_s29 }
   0xa   :  { %293 = vset.pattern.permute.xlu1 %v327_v2  ;;  %36 = vperm.xlu0 %291, %v17_v4   ;;  %p309_p3 = por %p308_p2, %p307_p1 }
   0xb   :  { %41 = vperm.xlu1 %293, %v18_v5  }
   0xc   :  { %p310_p4 = pnand %p309_p3, %p303_p0 }
   0xe   :  { %294 = vset.pattern.permute.xlu0 %v326_v1 }
   0xf   :  { %295 = vset.pattern.permute.xlu1 %v326_v1  ;;  %63 = vperm.xlu0 %294, %v17_v4  }
  0x10   :  { %67 = vperm.xlu1 %295, %v18_v5  }
  0x13   :  { %297 = vset.pattern.permute.xlu0 %v328_v8 }
  0x14   :  { %296 = vset.pattern.permute.xlu1 %v328_v8  ;;  %83 = vperm.xlu0 %297, %v16_v3  }
  0x15   :  { %79 = vperm.xlu1 %296, %v15_v0  }
  0x18   :  { %298 = vset.pattern.permute.xlu0 %v329_v9 }
  0x19   :  { %87 = vperm.xlu1 %296, %v17_v4   ;;  %197 = vperm.xlu0 %298, %v15_v0  }
  0x1d   :  { %91 = vperm.xlu1 %296, %v18_v5   ;;  %209 = vperm.xlu0 %298, %v18_v5  }
  0x21   :  { %299 = vset.pattern.permute.xlu1 %v329_v9  ;;  %301 = vset.pattern.permute.xlu0 %v330_v10 }
  0x22   :  { %201 = vperm.xlu1 %299, %v16_v3  }
  0x26   :  { %205 = vperm.xlu1 %299, %v17_v4  }
  0x2a   :  { %300 = vset.pattern.permute.xlu1 %v330_v10 }
  0x2b   :  { %226 = vperm.xlu1 %300, %v15_v0  }
  0x81   :  { %v56_v12 = vpop.permute.xlu1 %55  ;;  %v27_v13 = vpop.permute.xlu0 %26 }
  0x82   :  { %v50_v14 = vmul.f32 %v246_v11, %v27_v13 }
  0x84   :  { %v70_v17 = vadd.f32 %v56_v12, %v50_v14 }
  0x85   :  { %v60_v15 = vpop.permute.xlu1 %59  ;;  %v32_v16 = vpop.permute.xlu0 %31 }
  0x86   :  { %v51_v18 = vmul.f32 %v246_v11, %v32_v16  ;;  %v74_v21 = vmax.f32 %v70_v17, 0.0 }
  0x88   :  { %v71_v19 = vadd.f32 %v60_v15, %v51_v18 }
  0x89   :  { %v37_v20 = vpop.permute.xlu0 %36 }
  0x8a   :  { %v75_v22 = vmax.f32 %v71_v19, 0.0  ;;  %v42_v23 = vpop.permute.xlu1 %41  ;;  %v52_v25 = vmul.f32 %v246_v11, %v37_v20 }
  0x8b   :  { %v53_v26 = vmul.f32 %v246_v11, %v42_v23 }
  0x8c   :  { %v273_v24 = vpack.c.bf16 %v75_v22, %v74_v21 }
  0x8e   :  { %274 = vmatprep.subr.bf16.mxu0 %v273_v24  ;;  %281 = vmatprep.subr.bf16.mxu1 %v273_v24  ;;  %v64_v27 = vpop.permute.xlu0 %63 }
  0x8f   :  { %v72_v28 = vadd.f32 %v64_v27, %v52_v25  ;;  %v68_v29 = vpop.permute.xlu1 %67  ;;  %276 = vmatpush3.bf16.msra.mxu0 %v273_v24  ;;  %283 = vmatpush3.bf16.msra.mxu1 %v273_v24 }
  0x90   :  { %v73_v30 = vadd.f32 %v68_v29, %v53_v26 }
  0x91   :  { %v76_v31 = vmax.f32 %v72_v28, 0.0 }
  0x92   :  { %v77_v32 = vmax.f32 %v73_v30, 0.0 }
  0x93   :  { %v84_v38 = vpop.permute.xlu0 %83 }
  0x94   :  { %v277_v33 = vpack.c.bf16 %v77_v32, %v76_v31  ;;  %v80_v36 = vpop.permute.xlu1 %79 }
  0x96   :  { %278 = vmatprep.subr.bf16.mxu0 %v277_v33  ;;  %282 = vmatprep.subr.bf16.mxu1 %v277_v33 }
  0x97   :  { %280 = vmatpush3.bf16.msra.mxu0 %v277_v33  ;;  %284 = vmatpush3.bf16.msra.mxu1 %v277_v33 }
  0x98   :  { %v88_v37 = vpop.permute.xlu1 %87  ;;  %v198_v41 = vpop.permute.xlu0 %197 }
  0x9a   :  { %268 = vmatmul.mubr.msk.f32.vlgmr.msra.gmra.mrb[0].mxu0 %vm94_vm0, %v20_v34  ;;  %271 = vmatmul.mubr.msk.f32.vlgmr.msra.gmra.mrb[0].mxu1 %vm94_vm0, %v22_v35 }
  0x9c   :  { %v92_v39 = vpop.permute.xlu1 %91  ;;  %v210_v57 = vpop.permute.xlu0 %209 }
  0xa1   :  { %v202_v40 = vpop.permute.xlu1 %201 }
  0xa5   :  { %v206_v56 = vpop.permute.xlu1 %205 }
  0xaa   :  { %v227_v4 = vpop.permute.xlu1 %226 }
 0x16d   :  { %v269_v42 = vpop.f32.mrb[0].mxu0  ;;  %v272_v43 = vpop.f32.mrb[0].mxu1 }
 0x16e   :  { %v179_v44 = vadd.f32 %v269_v42, %v84_v38  ;;  %v173_v45 = vpop.f32.mrb[1].mxu0  ;;  %v183_v46 = vpop.f32.mrb[1].mxu1  ;;  %v189_v47 = vadd.f32 %v272_v43, %v92_v39 }
 0x16f   :  { %v174_v48 = vadd.f32 %v173_v45, %v80_v36  ;;  %v184_v49 = vadd.f32 %v183_v46, %v88_v37 }
 0x170   :  { %v193_v50 = vmax.f32 %v179_v44, 0.0  ;;  %v195_v54 = vmax.f32 %v189_v47, 0.0 }
 0x171   :  { %v192_v51 = vmax.f32 %v174_v48, 0.0  ;;  %v194_v52 = vmax.f32 %v184_v49, 0.0 }
 0x172   :  { %v213_v53 = vmul.f32 %v202_v40, %v193_v50  ;;  %v215_v61 = vmul.f32 %v210_v57, %v195_v54 }
 0x173   :  { %v212_v55 = vmul.f32 %v198_v41, %v192_v51  ;;  %v214_v58 = vmul.f32 %v206_v56, %v194_v52 }
 0x175   :  { %v216_v59 = vadd.f32 %v213_v53, %v212_v55 }
 0x177   :  { %v217_v60 = vadd.f32 %v216_v59, %v214_v58 }
 0x179   :  { %v218_v62 = vadd.f32 %v217_v60, %v215_v61 }
 0x17b   :  { %v219_v63 = vrot.slane %v218_v62, 4 }
 0x17d   :  { %v220_v0 = vadd.f32 %v219_v63, %v218_v62 }
 0x17f   :  { %v221_v1 = vrot.slane %v220_v0, 2 }
 0x181   :  { %v222_v2 = vadd.f32 %v221_v1, %v220_v0 }
 0x183   :  { %v223_v3 = vrot.slane %v222_v2, 1 }
 0x185   :  { %v224_v5 = vadd.f32 %v223_v3, %v222_v2 }
 0x187   :  { %v229_v6 = vadd.f32 %v227_v4, %v224_v5 }
 0x189   :  { %v230_v7 = vmax.f32 %v229_v6, 0.0 }
 0x18b   :  { %231 = vst [vmem:[#allocation2] sm:$0x1] %v230_v7 }
 0x18c   :  { %313 = shalt.err (!%p310_p4)
}
 0x18d   :  { %s314_s6 = scalar_lea.hbm %s398_s3, 16 }
 0x18e   :  { %p315_p5 = scmp.ne.s32.totalorder %s398_s3, %s314_s6  ;;  %p318_p6 = scmp.lt.u32.totalorder %s314_s6, %s398_s3 }
 0x190   :  { %p320_p7 = pnand %p318_p6, %p315_p5 }
 0x192   :  { %323 = shalt.err (!%p320_p7)
}
 0x193   :  { %241 = dma.vmem_to_hbm [thread:$0]  %s239_s28, 16, %s398_s3, [#allocation3]  }
 0x194   :  { %324 = dma.done.wait [#allocation3], 16  }
 0x195   :  { %325 = vsyncadd [#allocation3], 4294967280 }
 0x196   :  { %245 = vsyncpa [#allocation3], 1 }

</bundles_post_ra>
